<compile_context>
chip_gen: v5e
topology: v5e:2x2
jax: 0.10.0
libtpu: 0.0.40
codegen_flags: <defaults>
</compile_context>

<pallas_src>
import functools

import jax
import jax.numpy as jnp
from jax.experimental import pallas as pl
from jax.experimental.pallas import tpu as pltpu


def _outconv_kernel_vpu(x_ref, w_ref, b_ref, o_ref, *, cin):
    # x_ref: (Cin, TP)   w_ref: (Cout, Cin)   b_ref: (Cout, 1)   o_ref: (Cout, TP)
    # Contraction over Cin as a short static unroll of broadcasted FMAs on the
    # VPU; Cin is tiny so the MXU would be badly underfilled.
    acc = jnp.zeros(o_ref.shape, jnp.float32)
    for c in range(cin):
        acc = acc + (
            w_ref[:, c:c + 1].astype(jnp.float32)      # (Cout, 1)  -> lane broadcast
            * x_ref[c:c + 1, :].astype(jnp.float32)    # (1, TP)    -> sublane broadcast
        )
    o_ref[...] = (acc + b_ref[...].astype(jnp.float32)).astype(o_ref.dtype)


def _outconv_kernel_mxu(x_ref, w_ref, b_ref, o_ref):
    # Large-channel path: (Cout, Cin) @ (Cin, TP) on the MXU, f32 accumulate.
    acc = jnp.dot(w_ref[...], x_ref[...], preferred_element_type=jnp.float32)
    o_ref[...] = (acc + b_ref[...].astype(jnp.float32)).astype(o_ref.dtype)


def _pick_pixel_tile(hw, max_tile=2048):
    """Largest 128-aligned divisor of hw that is <= max_tile (full hw if not 128-aligned)."""
    if hw % 128 != 0:
        # Fall back to the full extent (block == full array dim is always legal).
        return hw
    t = min(max_tile, hw)
    t = max(128, (t // 128) * 128)
    while hw % t != 0:
        t -= 128
    return t


def out_conv(x_nchw, weight, bias, *, max_pixel_tile=2048):
    """1x1 Conv2d forward (matches nn.Conv2d(in_channels, out_channels, kernel_size=1)).

    x_nchw: (N, Cin, H, W)
    weight: (Cout, Cin, 1, 1)   -- PyTorch Conv2d weight layout
    bias:   (Cout,)
    returns (N, Cout, H, W)
    """
    n, cin, h, w = x_nchw.shape
    cout = weight.shape[0]
    hw = h * w

    # Pure reshapes of NCHW data -- no transposes, no extra HBM round trips.
    x_3d = x_nchw.reshape(n, cin, hw)      # (N, Cin, HW)
    w_mat = weight.reshape(cout, cin)      # (Cout, Cin)
    b_col = bias.reshape(cout, 1)          # (Cout, 1)

    tile_p = _pick_pixel_tile(hw, max_pixel_tile)
    grid = (n, hw // tile_p)

    if cin <= 16:
        kernel = functools.partial(_outconv_kernel_vpu, cin=cin)
    else:
        kernel = _outconv_kernel_mxu

    # Explicit scoped-VMEM budget: 2 buffers each for x/out tiles + weight/bias,
    # with generous headroom, clamped so it is safe on v5e/v6e/v7x alike.
    dsize = jnp.dtype(x_nchw.dtype).itemsize
    vmem_need = 2 * (cin + cout) * tile_p * dsize + cout * (cin + 1) * 4
    vmem_limit = int(min(max(4 * vmem_need, 8 << 20), 64 << 20))

    out_3d = pl.pallas_call(
        kernel,
        out_shape=jax.ShapeDtypeStruct((n, cout, hw), x_nchw.dtype),
        grid=grid,
        in_specs=[
            # x tile: batch dim squeezed, (Cin, TILE_P) in the kernel.
            pl.BlockSpec((None, cin, tile_p), lambda b, t: (b, 0, t)),
            # Weight/bias: grid-invariant, resident in VMEM (DMA'd once).
            pl.BlockSpec((cout, cin), lambda b, t: (0, 0)),
            pl.BlockSpec((cout, 1), lambda b, t: (0, 0)),
        ],
        # Output tile is (Cout, TILE_P): lane-dense (TILE_P multiple of 128).
        out_specs=pl.BlockSpec((None, cout, tile_p), lambda b, t: (b, 0, t)),
        compiler_params=pltpu.CompilerParams(
            dimension_semantics=("parallel", "parallel"),
            vmem_limit_bytes=vmem_limit,
        ),
    )(x_3d, w_mat, b_col)

    return out_3d.reshape(n, cout, h, w)


if __name__ == "__main__":
    key = jax.random.PRNGKey(0)
    k_x, k_w, k_b = jax.random.split(key, 3)

    N, CIN, COUT, H, W = 2, 4, 3, 16, 16
    x = jax.random.normal(k_x, (N, CIN, H, W), dtype=jnp.float32)
    # Deterministic synthetic parameters (Conv2d weight layout: (Cout, Cin, 1, 1)).
    weight = jax.random.normal(k_w, (COUT, CIN, 1, 1), dtype=jnp.float32) * 0.1
    bias = jax.random.normal(k_b, (COUT,), dtype=jnp.float32) * 0.1

    y = out_conv(x, weight, bias)
    jax.block_until_ready(y)

    # Reference check against plain-JAX 1x1 conv (same math as nn.Conv2d(k=1)).
    y_ref = (
        jnp.einsum("nchw,oc->nohw", x, weight.reshape(COUT, CIN))
        + bias[None, :, None, None]
    )
    assert y.shape == (N, COUT, H, W)
    assert jnp.allclose(y, y_ref, atol=1e-5, rtol=1e-5)
    print("KERNEL_OK")
</pallas_src>

<mosaic_0001>
module attributes {stable_mosaic.version = 11 : i64} {
  func.func @_outconv_kernel_vpu(%arg0: i32, %arg1: i32, %arg2: memref<1x4x256xf32, #tpu.memory_space<vmem>>, %arg3: memref<3x4xf32, #tpu.memory_space<vmem>>, %arg4: memref<3x1xf32, #tpu.memory_space<vmem>>, %arg5: memref<1x3x256xf32, #tpu.memory_space<vmem>>) attributes {dimension_semantics = [#tpu.dimension_semantics<parallel>, #tpu.dimension_semantics<parallel>], iteration_bounds = array<i64: 2, 1>, scalar_prefetch = 0 : i64, scratch_operands = 0 : i64, tpu.core_type = #tpu.core_type<tc>, window_params = [{transform_indices = @transform_0, window_bounds = array<i64: 1, 4, 256>}, {pipeline_mode = #tpu.pipeline_mode<synchronous>, transform_indices = @transform_1, window_bounds = array<i64: 3, 4>}, {pipeline_mode = #tpu.pipeline_mode<synchronous>, transform_indices = @transform_2, window_bounds = array<i64: 3, 1>}, {transform_indices = @transform_3, window_bounds = array<i64: 1, 3, 256>}]} {
    %cst = arith.constant 0.000000e+00 : f32
    %0 = vector.broadcast %cst : f32 to vector<3x256xf32>
    %c0 = arith.constant 0 : index
    %c0_0 = arith.constant 0 : index
    %1 = vector.load %arg3[%c0, %c0_0] : memref<3x4xf32, #tpu.memory_space<vmem>>, vector<3x1xf32>
    %c0_1 = arith.constant 0 : index
    %c0_2 = arith.constant 0 : index
    %c0_3 = arith.constant 0 : index
    %2 = vector.load %arg2[%c0_1, %c0_2, %c0_3] : memref<1x4x256xf32, #tpu.memory_space<vmem>>, vector<1x1x256xf32>
    %3 = vector.shape_cast %2 : vector<1x1x256xf32> to vector<1x256xf32>
    %4 = vector.broadcast %1 : vector<3x1xf32> to vector<3x256xf32>
    %5 = vector.broadcast %3 : vector<1x256xf32> to vector<3x256xf32>
    %6 = arith.mulf %4, %5 : vector<3x256xf32>
    %7 = arith.addf %0, %6 : vector<3x256xf32>
    %c0_4 = arith.constant 0 : index
    %c1 = arith.constant 1 : index
    %8 = vector.load %arg3[%c0_4, %c1] : memref<3x4xf32, #tpu.memory_space<vmem>>, vector<3x1xf32>
    %c0_5 = arith.constant 0 : index
    %c1_6 = arith.constant 1 : index
    %c0_7 = arith.constant 0 : index
    %9 = vector.load %arg2[%c0_5, %c1_6, %c0_7] : memref<1x4x256xf32, #tpu.memory_space<vmem>>, vector<1x1x256xf32>
    %10 = vector.shape_cast %9 : vector<1x1x256xf32> to vector<1x256xf32>
    %11 = vector.broadcast %8 : vector<3x1xf32> to vector<3x256xf32>
    %12 = vector.broadcast %10 : vector<1x256xf32> to vector<3x256xf32>
    %13 = arith.mulf %11, %12 : vector<3x256xf32>
    %14 = arith.addf %7, %13 : vector<3x256xf32>
    %c0_8 = arith.constant 0 : index
    %c2 = arith.constant 2 : index
    %15 = vector.load %arg3[%c0_8, %c2] : memref<3x4xf32, #tpu.memory_space<vmem>>, vector<3x1xf32>
    %c0_9 = arith.constant 0 : index
    %c2_10 = arith.constant 2 : index
    %c0_11 = arith.constant 0 : index
    %16 = vector.load %arg2[%c0_9, %c2_10, %c0_11] : memref<1x4x256xf32, #tpu.memory_space<vmem>>, vector<1x1x256xf32>
    %17 = vector.shape_cast %16 : vector<1x1x256xf32> to vector<1x256xf32>
    %18 = vector.broadcast %15 : vector<3x1xf32> to vector<3x256xf32>
    %19 = vector.broadcast %17 : vector<1x256xf32> to vector<3x256xf32>
    %20 = arith.mulf %18, %19 : vector<3x256xf32>
    %21 = arith.addf %14, %20 : vector<3x256xf32>
    %c0_12 = arith.constant 0 : index
    %c3 = arith.constant 3 : index
    %22 = vector.load %arg3[%c0_12, %c3] : memref<3x4xf32, #tpu.memory_space<vmem>>, vector<3x1xf32>
    %c0_13 = arith.constant 0 : index
    %c3_14 = arith.constant 3 : index
    %c0_15 = arith.constant 0 : index
    %23 = vector.load %arg2[%c0_13, %c3_14, %c0_15] : memref<1x4x256xf32, #tpu.memory_space<vmem>>, vector<1x1x256xf32>
    %24 = vector.shape_cast %23 : vector<1x1x256xf32> to vector<1x256xf32>
    %25 = vector.broadcast %22 : vector<3x1xf32> to vector<3x256xf32>
    %26 = vector.broadcast %24 : vector<1x256xf32> to vector<3x256xf32>
    %27 = arith.mulf %25, %26 : vector<3x256xf32>
    %28 = arith.addf %21, %27 : vector<3x256xf32>
    %c0_16 = arith.constant 0 : index
    %c0_17 = arith.constant 0 : index
    %29 = vector.load %arg4[%c0_16, %c0_17] : memref<3x1xf32, #tpu.memory_space<vmem>>, vector<3x1xf32>
    %30 = vector.broadcast %29 : vector<3x1xf32> to vector<3x256xf32>
    %31 = arith.addf %28, %30 : vector<3x256xf32>
    %c0_18 = arith.constant 0 : index
    %c0_19 = arith.constant 0 : index
    %c0_20 = arith.constant 0 : index
    %32 = vector.load %arg5[%c0_18, %c0_19, %c0_20] : memref<1x3x256xf32, #tpu.memory_space<vmem>>, vector<1x3x256xf32>
    %33 = vector.shape_cast %32 : vector<1x3x256xf32> to vector<3x256xf32>
    %34 = vector.shape_cast %31 : vector<3x256xf32> to vector<1x3x256xf32>
    tpu.vector_store %arg5[%c0_18, %c0_19, %c0_20], %34 {strides = array<i32>} : memref<1x3x256xf32, #tpu.memory_space<vmem>>, vector<1x3x256xf32>,
    return
  }
  func.func @transform_0(%arg0: i32, %arg1: i32) -> (i32, i32, i32) {
    %c0_i32 = arith.constant 0 : i32
    %c0_i32_0 = arith.constant 0 : i32
    return %arg0, %c0_i32, %arg1 : i32, i32, i32
  }
  func.func @transform_1(%arg0: i32, %arg1: i32) -> (i32, i32) {
    %c0_i32 = arith.constant 0 : i32
    %c0_i32_0 = arith.constant 0 : i32
    %c0_i32_1 = arith.constant 0 : i32
    return %c0_i32, %c0_i32_0 : i32, i32
  }
  func.func @transform_2(%arg0: i32, %arg1: i32) -> (i32, i32) {
    %c0_i32 = arith.constant 0 : i32
    %c0_i32_0 = arith.constant 0 : i32
    %c0_i32_1 = arith.constant 0 : i32
    return %c0_i32, %c0_i32_0 : i32, i32
  }
  func.func @transform_3(%arg0: i32, %arg1: i32) -> (i32, i32, i32) {
    %c0_i32 = arith.constant 0 : i32
    %c0_i32_0 = arith.constant 0 : i32
    return %arg0, %c0_i32, %arg1 : i32, i32, i32
  }
}

</mosaic_0001>

<bundles_post_ra>
// kernel: tpu_custom_call.1
= control target key start
LH: loop header
LB: loop body
LE: loop exit
PB: predicated region body
PF: predicated region fallthrough
CT: control target
= control target key end

     0   :  { %8 = vsyncpa [#allocation3], 0  ;;  %s673_s0 = inlined_call_operand.hbm [shape: f32[2,4,256], index: 0, kind: input, shape index: {}]   ;;  %s674_s1 = inlined_call_operand.vmem [shape: f32[3,4], index: 1, kind: input, shape index: {}]   ;;  %s675_s2 = inlined_call_operand.vmem [shape: f32[3,1], index: 2, kind: input, shape index: {}]   ;;  %s676_s3 = inlined_call_operand.vmem [shape: f32[2,3,256], index: 3, kind: output, shape index: {}]  }
   0x1   :  { %10 = vsyncpa [#allocation3 + $0x1], 0  ;;  %s579_s12 = smov 0   ;;  %s581_s13 = smov 0  }
   0x2   :  { %s583_s14 = smov 0   ;;  %s585_s15 = smov 0  }
   0x3   :  { %s587_s16 = smov 0   ;;  %s589_s17 = smov 0  }
   0x4 LB: > { %s390_s18 = sadd.s32 4294967295, %s553_s17   ;;  %s28_s19 = sadd.s32 1, %s549_s16  ;;  %s553_s17 = sphi %s589_s17, %s16_s17   ;;  %s549_s16 = sphi %s587_s16, %s683_s16   ;;  %s545_s15 = sphi %s585_s15, %s682_s15   ;;  %s541_s14 = sphi %s583_s14, %s681_s14   ;;  %s537_s13 = sphi %s581_s13, %s680_s13   ;;  %s533_s12 = sphi %s579_s12, %s679_s12  }
   0x5   : > { %p30_p0 = scmp.ge.s32.totalorder %s28_s19, 2  ;;  %s37_s20 = sadd.s32 1, %s541_s14 }
   0x6   : > { %p44_p1 = scmp.ne.s32.totalorder %s541_s14, %s537_s13  ;;  %p45_p2 = scmp.eq.s32.totalorder %s553_s17, 0 }
   0x7   : > { %s685_s19 = smov (%p30_p0, %s28_s19), 0  ;;  %p50_p4 = scmp.ne.s32.totalorder %s537_s13, %s533_s12 }
   0x8   : > { %p615_p3 = por %p45_p2, %p44_p1  ;;  %s32_s22 = ssub.s32 %s549_s16, %s685_s19 }
   0x9   : > { %p51_p5 = scmp.eq.s32.totalorder %s390_s18, 0  ;;  %p35_p6 = scmp.eq.s32.totalorder %s32_s22, 0 }
   0xa   : > { %p414_p8 = scmp.lt.s32.totalorder %s553_s17, 2  ;;  %s150_s25 = sand.u32 1, %s541_s14  }
   0xb   : > { %p622_p7 = por %p51_p5, %p50_p4  ;;  %s406_s26 = sshll.u32 %s549_s16, 3 }
   0xc   : > { %s628_s24 = scalar_select %p35_p6, %s541_s14, %s37_s20  }
   0xd   : > { %s394_s27 = sshll.u32 %s150_s25, 3  ;;  %s161_s30 = scalar_lea.hbm %s673_s0, %s406_s26 }
   0xe   : > { %s163_s4 = sshll.u32 %s161_s30, 4  ;;  %s154_s5 = scalar_lea.vmem [#allocation2], %s394_s27  ;;  %s164_s4 = int_to_ptr.hbm [resolvable:$true] %s163_s4 }
   0xf   : > { %s165_s6 = sshll.u32 %s154_s5, 4  ;;  %p411_p9 = pnand %p414_p8, %p615_p3  ;;  %s166_s6 = int_to_ptr.vmem [resolvable:$true] %s165_s6 }
  0x10   : > { %p397_p10 = scmp.ge.s32.totalorder %s553_s17, 1  ;;  %p170_p11 = scmp.lt.s32.totalorder %s553_s17, 3 }
  0x11   : > { %s151_s7 = scalar_lea.sflag [#allocation3], %s150_s25 }
  0x12   : > { %413 = dma.hbm_to_vmem [thread:$0]  (!%p411_p9), %s164_s4, 128, %s166_s6, %s151_s7  }
  0x13   : > { %p171_p12 = pnand %p397_p10, %p170_p11 }
  0x14   : > { %s176_s8 = sand.u32 (!%p171_p12), 1, %s537_s13  }
  0x15   : > { %174 = sbr.rel (%p171_p12) target bundleno = 167 (0xa7), region = 32  ;;  %s398_s9 = sshll.u32 (!%p171_p12), %s176_s8, 3 }
  0x16   : > { %s177_s10 = scalar_lea.sflag (!%p171_p12), [#allocation3], %s176_s8  ;;  %s180_s11 = scalar_lea.vmem (!%p171_p12), [#allocation2], %s398_s9 }
  0x1a   : > { %528 = dma.done.wait (%p622_p7), %s177_s10, 128  }
  0x1b   : > { %530 = vsyncadd (%p622_p7), %s177_s10, 4294967168  ;;  %v555_v0 = vmov 0   ;;  %v556_v1 = vmov 2   ;;  %v219_v2 = vld [vmem:[%s674_s1] sm:$0x7]  ;;  %v557_v4 = vmov 1  }
  0x1c   : > { %467 = vset.pattern.permute.xlu0 %v555_v0  ;;  %469 = vset.pattern.permute.xlu1 %v556_v1  ;;  %v280_v3 = vld [vmem:[%s675_s2] sm:$0x7]  ;;  %v558_v5 = vmov 3   ;;  %v403_v11 = vld [vmem:[%s180_s11 + $0x3] ss:$4 sm:$0x3] }
  0x1d   : > { %471 = vset.pattern.permute.xlu2 %v555_v0  ;;  %223 = vperm.xlu0 %467, %v219_v2   ;;  %v220_v8 = vld [vmem:[%s180_s11] ss:$4 sm:$0x3]  ;;  %v401_v9 = vld [vmem:[%s180_s11 + $0x1] ss:$4 sm:$0x3] }
  0x1e   : > { %253 = vperm.xlu1 %469, %v219_v2   ;;  %283 = vperm.xlu2 %471, %v280_v3   ;;  %v402_v10 = vld [vmem:[%s180_s11 + $0x2] ss:$4 sm:$0x3]  ;;  %v227_v12 = vperm.slane %v220_v8, 0  ;;  %v228_v13 = vperm.slane %v220_v8, 1  ;;  %v242_v14 = vperm.slane %v401_v9, 0 }
  0x1f   : > { %v243_v15 = vperm.slane %v401_v9, 1  ;;  %v257_v16 = vperm.slane %v402_v10, 0  ;;  %v258_v17 = vperm.slane %v402_v10, 1  ;;  %v272_v18 = vperm.slane %v403_v11, 0  ;;  %p210_p13 = scmp.lt.s32.totalorder %s545_s15, 1 }
  0x20   : > { %v273_v19 = vperm.slane %v403_v11, 1  ;;  %vm291_vm0 = vcmask 1043456  }
  0x21   : > { %s687_s15 = smov (!%p210_p13, %s545_s15), 1 }
  0x22   : > { %s407_s22 = sshll.u32 %s687_s15, 3 }
  0x23   : > { %s217_s26 = scalar_lea.vmem %s676_s3, %s407_s22 }
  0x25   : > { %468 = vset.pattern.permute.xlu0 %v557_v4 }
  0x26   : > { %470 = vset.pattern.permute.xlu1 %v558_v5  ;;  %238 = vperm.xlu0 %468, %v219_v2  }
  0x27   : > { %268 = vperm.xlu1 %470, %v219_v2  }
  0x2e   : > { %472 = vset.pattern.permute.xlu0 %v555_v0 }
  0x78   : > { %v284_v34 = vpop.permute.xlu2 %283 }
  0x8f   : > { %v224_v6 = vpop.permute.xlu0 %223 }
  0x90   : > { %v254_v7 = vpop.permute.xlu1 %253  ;;  %v231_v22 = vmul.f32 %v227_v12, %v224_v6  ;;  %v232_v23 = vmul.f32 %v228_v13, %v224_v6 }
  0x91   : > { %v261_v26 = vmul.f32 %v257_v16, %v254_v7  ;;  %v262_v27 = vmul.f32 %v258_v17, %v254_v7 }
  0x98   : > { %v239_v20 = vpop.permute.xlu0 %238 }
  0x99   : > { %v269_v21 = vpop.permute.xlu1 %268  ;;  %v246_v24 = vmul.f32 %v242_v14, %v239_v20  ;;  %v247_v25 = vmul.f32 %v243_v15, %v239_v20 }
  0x9a   : > { %v276_v30 = vmul.f32 %v272_v18, %v269_v21  ;;  %v277_v31 = vmul.f32 %v273_v19, %v269_v21 }
  0x9b   : > { %v248_v28 = vadd.f32 %v246_v24, %v231_v22  ;;  %v249_v29 = vadd.f32 %v247_v25, %v232_v23 }
  0x9d   : > { %v263_v32 = vadd.f32 %v261_v26, %v248_v28  ;;  %v264_v33 = vadd.f32 %v262_v27, %v249_v29 }
  0x9f   : > { %v278_v35 = vadd.f32 %v276_v30, %v263_v32  ;;  %v279_v36 = vadd.f32 %v277_v31, %v264_v33 }
  0xa1   : > { %v287_v37 = vadd.f32 %v284_v34, %v279_v36  ;;  %v286_v38 = vadd.f32 %v284_v34, %v278_v35 }
  0xa3   : > { %v290_v39 = vrot.slane %v287_v37, 4 }
  0xa5   : > { %v292_v40 = vsel %vm291_vm0, %v286_v38, %v290_v39 }
  0xa6   : > { %294 = vst [vmem:[%s217_s26] sm:$0x77] %v292_v40 }
  0xa7 PF: > { %s16_s17 = sadd.s32 1, %s553_s17   ;;  %s679_s12 = smov %s537_s13 }
  0xa8   : > { %p13_p0 = scmp.ge.s32.totalorder %s16_s17, 4   ;;  %s680_s13 = smov %s541_s14 }
  0xa9   : > { %s681_s14 = smov %s628_s24  ;;  %s682_s15 = smov %s549_s16 }
  0xaa   : > { %s683_s16 = smov %s685_s19  ;;  %15 = sbr.rel (!%p13_p0) target bundleno = 4 (0x4), region = 75 }
  0xaf   :  { %325 = vsyncpa [#allocation3], 1 }
  0xb0   :  { %327 = vsyncpa [#allocation3 + $0x1], 1 }

</bundles_post_ra>
